<compile_context>
chip_gen: v7x
topology: tpu7x:2x2x1
jax: 0.10.0
libtpu: 0.0.40
codegen_flags: <defaults>
</compile_context>

<pallas_src>
import functools

import jax
import jax.numpy as jnp
from jax.experimental import pallas as pl
from jax.experimental.pallas import tpu as pltpu

LANE = 128
SUBLANE = 8
# Only force >=2 batch-grid steps (v7x megacore) once the batch is big enough
# that the extra ~0.35 us per grid step is noise; below this a single tile is
# cheaper on the single-TC v5e/v6e acting path.
_MIN_ROWS_FOR_SPLIT = 128


def _round_up(x, m):
    return ((x + m - 1) // m) * m


# --------------------------------------------------------------------------
# Kernel
# --------------------------------------------------------------------------
def qnet_kernel(x_ref, w_ref, b_ref, out_ref, *, n_layers, state_size):
    """One batch tile of the full MLP.

    x_ref  : (TB, S)   f32   unpadded state tile (pipelined over the batch grid)
    w_ref  : (L, D, D) bf16  packed [input, hidden..., output] weights (resident)
    b_ref  : (L, 1, D) f32   packed biases (resident)
    out_ref: (TB, D)   f32   lane-dense padded Q-values
    """
    # Input layer: K = state_size matmul against a static row-slice of the
    # padded weight block (rows >= state_size are zero-padded anyway).  Doing
    # the "feature pad" here instead of in the wrapper keeps the HBM input
    # stream at B*S*4 bytes instead of B*128*4 (8x less at S=16).
    x = x_ref[...].astype(jnp.bfloat16)
    acc = jnp.dot(x, w_ref[0, :state_size, :],
                  preferred_element_type=jnp.float32)
    h = jnp.maximum(acc + b_ref[0], 0.0)
    # (dropout: identity in inference mode)

    # Hidden layers: bf16 MXU matmul, f32 accumulate, f32 bias+ReLU epilogue
    # (v5e's VPU has no bf16 -> keep the epilogue f32 on all generations).
    # n_layers is static -> loop is unrolled at trace time.
    for li in range(1, n_layers - 1):
        acc = jnp.dot(h.astype(jnp.bfloat16), w_ref[li],
                      preferred_element_type=jnp.float32)
        h = jnp.maximum(acc + b_ref[li], 0.0)
        # (dropout: identity in inference mode)

    # Output layer: no activation.  Lane-dense (TB, 128) unmasked store; the
    # real action_size columns are sliced out in the wrapper.
    q = jnp.dot(h.astype(jnp.bfloat16), w_ref[n_layers - 1],
                preferred_element_type=jnp.float32)
    out_ref[...] = q + b_ref[n_layers - 1]


# --------------------------------------------------------------------------
# Wrapper
# --------------------------------------------------------------------------
def qnetwork_forward(state, w_packed, b_packed, *, action_size,
                     block_batch=512):
    """Fused MLP forward. state: (B, state_size) f32. Returns (B, action_size).

    NOTE (acting path, B~1-8): the call is launch/DMA-overhead bound; batch
    multiple agent steps per call or keep params resident across calls rather
    than tuning tile sizes here.
    """
    B, S = state.shape
    L, D, _ = w_packed.shape

    # ---- batch tiling ----------------------------------------------------
    B_pad = _round_up(max(B, SUBLANE), SUBLANE)
    tb = min(block_batch, B_pad)
    # v7x has 2 TensorCores per chip; the "parallel" batch axis only shards
    # across both when the grid has >=2 steps.  Cap the tile at ~B/2 for
    # large batches so one tile never swallows the whole batch.
    if B_pad >= _MIN_ROWS_FOR_SPLIT and tb >= B_pad:
        tb = _round_up(pl.cdiv(B_pad, 2), SUBLANE)
    B_pad = _round_up(B_pad, tb)

    # Pad only the batch axis (rows), never the feature axis: the feature pad
    # happens for free inside the kernel via the static weight row-slice.
    if B_pad != B:
        x = jnp.zeros((B_pad, S), jnp.float32).at[:B].set(
            state.astype(jnp.float32))
    else:
        x = state.astype(jnp.float32)

    # ---- VMEM budget -------------------------------------------------------
    # Resident-params design ceiling: the constant-index weight/bias blocks are
    # double-buffered by the pipeliner (2 * L*D*D*2 B for bf16 W), which is the
    # only term that scales quadratically with hid_units.  ~0.4 MiB at D=128;
    # re-tile over a layer/K axis (or single-buffer the param specs) before
    # hid_units pushes this toward v7x's 64 MiB per-TC VMEM.
    param_bytes = 2 * (L * D * D * 2 + L * D * 4)       # double-buffered W + b
    act_bytes = 2 * (tb * S * 4 + tb * D * 4)           # double-buffered in/out tiles
    vmem_limit = min(64 * 1024 * 1024,
                     max(2 * (param_bytes + act_bytes), 32 * 1024 * 1024))

    out = pl.pallas_call(
        functools.partial(qnet_kernel, n_layers=L, state_size=S),
        out_shape=jax.ShapeDtypeStruct((B_pad, D), jnp.float32),
        grid=(B_pad // tb,),
        in_specs=[
            # Activation tile: pipelined over the batch grid.  Last block dim
            # equals the full array dim (S), so the sub-(8,128) block is legal.
            pl.BlockSpec((tb, S), lambda i: (i, 0)),
            # Packed weights / biases: constant block index -> DMA'd once and
            # VMEM-resident across all grid steps.
            pl.BlockSpec((L, D, D), lambda i: (0, 0, 0)),
            pl.BlockSpec((L, 1, D), lambda i: (0, 0, 0)),
        ],
        out_specs=pl.BlockSpec((tb, D), lambda i: (i, 0)),
        compiler_params=pltpu.CompilerParams(
            dimension_semantics=("parallel",),   # v7x: batch grid over both TCs
            vmem_limit_bytes=vmem_limit),
    )(x, w_packed, b_packed)

    return out[:B, :action_size]


# --------------------------------------------------------------------------
# Parameter init / packing / reference
# --------------------------------------------------------------------------
def init_params(key, state_size, action_size, n_hid_layers, hid_units):
    """PyTorch-Linear-style init: U(-1/sqrt(fan_in), 1/sqrt(fan_in)). (in,out) layout."""
    def linear(k, fan_in, fan_out):
        kw, kb = jax.random.split(k)
        bound = 1.0 / jnp.sqrt(jnp.float32(fan_in))
        w = jax.random.uniform(kw, (fan_in, fan_out), jnp.float32, -bound, bound)
        b = jax.random.uniform(kb, (fan_out,), jnp.float32, -bound, bound)
        return w, b

    keys = jax.random.split(key, n_hid_layers + 2)
    w_in, b_in = linear(keys[0], state_size, hid_units)
    w_hs, b_hs = [], []
    for i in range(n_hid_layers):
        w, b = linear(keys[1 + i], hid_units, hid_units)
        w_hs.append(w)
        b_hs.append(b)
    w_out, b_out = linear(keys[-1], hid_units, action_size)
    return w_in, b_in, w_hs, b_hs, w_out, b_out


def pack_params(params, state_size, hid_units, action_size, n_hid_layers, D):
    """Zero-pad every layer to (D, D) / (1, D) and stack into 2 buffers."""
    w_in, b_in, w_hs, b_hs, w_out, b_out = params
    L = n_hid_layers + 2
    W = jnp.zeros((L, D, D), jnp.float32)
    Bb = jnp.zeros((L, 1, D), jnp.float32)
    W = W.at[0, :state_size, :hid_units].set(w_in)
    Bb = Bb.at[0, 0, :hid_units].set(b_in)
    for i in range(n_hid_layers):
        W = W.at[1 + i, :hid_units, :hid_units].set(w_hs[i])
        Bb = Bb.at[1 + i, 0, :hid_units].set(b_hs[i])
    W = W.at[L - 1, :hid_units, :action_size].set(w_out)
    Bb = Bb.at[L - 1, 0, :action_size].set(b_out)
    # Weights feed the MXU in bf16 (half the bytes, full MXU rate on v6e/v7x).
    return W.astype(jnp.bfloat16), Bb


def reference_forward(state, params, *, emulate_bf16):
    w_in, b_in, w_hs, b_hs, w_out, b_out = params

    def mm(a, w):
        if emulate_bf16:
            return jnp.dot(a.astype(jnp.bfloat16), w.astype(jnp.bfloat16),
                           preferred_element_type=jnp.float32)
        return jnp.dot(a, w)

    h = jnp.maximum(mm(state, w_in) + b_in, 0.0)
    for w, b in zip(w_hs, b_hs):
        h = jnp.maximum(mm(h, w) + b, 0.0)
    return mm(h, w_out) + b_out


# --------------------------------------------------------------------------
if __name__ == "__main__":
    batch = 8
    state_size = 16
    action_size = 4
    n_hid_layers = 4
    hid_units = 64  # module default

    key = jax.random.PRNGKey(0)
    k_params, k_state, k_state2 = jax.random.split(key, 3)

    params = init_params(k_params, state_size, action_size, n_hid_layers, hid_units)

    D = max(LANE, _round_up(state_size, LANE), _round_up(hid_units, LANE),
            _round_up(action_size, LANE))
    w_packed, b_packed = pack_params(params, state_size, hid_units,
                                     action_size, n_hid_layers, D)

    # The PyTorch forward stacks a list of state tensors -> (B, state_size) f32.
    state = jax.random.normal(k_state, (batch, state_size), dtype=jnp.float32)

    q_values = qnetwork_forward(state, w_packed, b_packed,
                                action_size=action_size)
    q_values = jax.block_until_ready(q_values)
    assert q_values.shape == (batch, action_size)

    # Exact-semantics reference (same bf16 MXU inputs, f32 accumulate/epilogue).
    q_ref_bf16 = reference_forward(state, params, emulate_bf16=True)
    assert jnp.allclose(q_values, q_ref_bf16, atol=1e-4, rtol=1e-4), float(
        jnp.max(jnp.abs(q_values - q_ref_bf16)))

    # Pure-f32 reference (spec fidelity; loose tol covers bf16 quantization).
    q_ref_f32 = reference_forward(state, params, emulate_bf16=False)
    assert jnp.allclose(q_values, q_ref_f32, atol=1e-1, rtol=1e-1), float(
        jnp.max(jnp.abs(q_values - q_ref_f32)))

    # Larger (replay-style) batch: exercises batch padding and the >=2-step
    # grid path ("parallel" axis -> both TCs on v7x).
    big_batch = 190
    state_big = jax.random.normal(k_state2, (big_batch, state_size),
                                  dtype=jnp.float32)
    q_big = qnetwork_forward(state_big, w_packed, b_packed,
                             action_size=action_size)
    q_big = jax.block_until_ready(q_big)
    assert q_big.shape == (big_batch, action_size)
    q_big_ref = reference_forward(state_big, params, emulate_bf16=True)
    assert jnp.allclose(q_big, q_big_ref, atol=1e-4, rtol=1e-4), float(
        jnp.max(jnp.abs(q_big - q_big_ref)))

    print("KERNEL_OK")
</pallas_src>

<mosaic_0001>
module attributes {stable_mosaic.version = 11 : i64} {
  func.func @qnet_kernel(%arg0: i32, %arg1: memref<8x16xf32, #tpu.memory_space<vmem>>, %arg2: memref<6x128x128xbf16, #tpu.memory_space<vmem>>, %arg3: memref<6x1x128xf32, #tpu.memory_space<vmem>>, %arg4: memref<8x128xf32, #tpu.memory_space<vmem>>) attributes {dimension_semantics = [#tpu.dimension_semantics<parallel>], iteration_bounds = array<i64: 1>, scalar_prefetch = 0 : i64, scratch_operands = 0 : i64, tpu.core_type = #tpu.core_type<tc>, window_params = [{transform_indices = @transform_0, window_bounds = array<i64: 8, 16>}, {pipeline_mode = #tpu.pipeline_mode<synchronous>, transform_indices = @transform_1, window_bounds = array<i64: 6, 128, 128>}, {pipeline_mode = #tpu.pipeline_mode<synchronous>, transform_indices = @transform_2, window_bounds = array<i64: 6, 1, 128>}, {transform_indices = @transform_3, window_bounds = array<i64: 8, 128>}]} {
    %c0 = arith.constant 0 : index
    %c0_0 = arith.constant 0 : index
    %0 = vector.load %arg1[%c0, %c0_0] : memref<8x16xf32, #tpu.memory_space<vmem>>, vector<8x16xf32>
    %1 = arith.truncf %0 : vector<8x16xf32> to vector<8x16xbf16>
    %c0_1 = arith.constant 0 : index
    %c0_2 = arith.constant 0 : index
    %c0_3 = arith.constant 0 : index
    %2 = vector.load %arg2[%c0_1, %c0_2, %c0_3] : memref<6x128x128xbf16, #tpu.memory_space<vmem>>, vector<1x16x128xbf16>
    %3 = vector.shape_cast %2 : vector<1x16x128xbf16> to vector<16x128xbf16>
    %cst = arith.constant dense<0.000000e+00> : vector<8x128xf32>
    %4 = tpu.matmul %1, %3, %cst {dimension_numbers = #tpu.dot_dimension_numbers<[1], [0], [0], [1], [0, 0, 1, 1], [], []>} : vector<8x16xbf16>, vector<16x128xbf16>, vector<8x128xf32> -> vector<8x128xf32>
    %c0_4 = arith.constant 0 : index
    %c0_5 = arith.constant 0 : index
    %c0_6 = arith.constant 0 : index
    %5 = vector.load %arg3[%c0_4, %c0_5, %c0_6] : memref<6x1x128xf32, #tpu.memory_space<vmem>>, vector<1x1x128xf32>
    %6 = vector.shape_cast %5 : vector<1x1x128xf32> to vector<1x128xf32>
    %7 = vector.broadcast %6 : vector<1x128xf32> to vector<8x128xf32>
    %8 = arith.addf %4, %7 : vector<8x128xf32>
    %cst_7 = arith.constant 0.000000e+00 : f32
    %9 = vector.broadcast %cst_7 : f32 to vector<8x128xf32>
    %10 = arith.maximumf %8, %9 : vector<8x128xf32>
    %11 = arith.truncf %10 : vector<8x128xf32> to vector<8x128xbf16>
    %c1 = arith.constant 1 : index
    %c0_8 = arith.constant 0 : index
    %c0_9 = arith.constant 0 : index
    %12 = vector.load %arg2[%c1, %c0_8, %c0_9] : memref<6x128x128xbf16, #tpu.memory_space<vmem>>, vector<1x128x128xbf16>
    %13 = vector.shape_cast %12 : vector<1x128x128xbf16> to vector<128x128xbf16>
    %cst_10 = arith.constant dense<0.000000e+00> : vector<8x128xf32>
    %14 = tpu.matmul %11, %13, %cst_10 {dimension_numbers = #tpu.dot_dimension_numbers<[1], [0], [0], [1], [0, 0, 1, 1], [], []>} : vector<8x128xbf16>, vector<128x128xbf16>, vector<8x128xf32> -> vector<8x128xf32>
    %c1_11 = arith.constant 1 : index
    %c0_12 = arith.constant 0 : index
    %c0_13 = arith.constant 0 : index
    %15 = vector.load %arg3[%c1_11, %c0_12, %c0_13] : memref<6x1x128xf32, #tpu.memory_space<vmem>>, vector<1x1x128xf32>
    %16 = vector.shape_cast %15 : vector<1x1x128xf32> to vector<1x128xf32>
    %17 = vector.broadcast %16 : vector<1x128xf32> to vector<8x128xf32>
    %18 = arith.addf %14, %17 : vector<8x128xf32>
    %cst_14 = arith.constant 0.000000e+00 : f32
    %19 = vector.broadcast %cst_14 : f32 to vector<8x128xf32>
    %20 = arith.maximumf %18, %19 : vector<8x128xf32>
    %21 = arith.truncf %20 : vector<8x128xf32> to vector<8x128xbf16>
    %c2 = arith.constant 2 : index
    %c0_15 = arith.constant 0 : index
    %c0_16 = arith.constant 0 : index
    %22 = vector.load %arg2[%c2, %c0_15, %c0_16] : memref<6x128x128xbf16, #tpu.memory_space<vmem>>, vector<1x128x128xbf16>
    %23 = vector.shape_cast %22 : vector<1x128x128xbf16> to vector<128x128xbf16>
    %cst_17 = arith.constant dense<0.000000e+00> : vector<8x128xf32>
    %24 = tpu.matmul %21, %23, %cst_17 {dimension_numbers = #tpu.dot_dimension_numbers<[1], [0], [0], [1], [0, 0, 1, 1], [], []>} : vector<8x128xbf16>, vector<128x128xbf16>, vector<8x128xf32> -> vector<8x128xf32>
    %c2_18 = arith.constant 2 : index
    %c0_19 = arith.constant 0 : index
    %c0_20 = arith.constant 0 : index
    %25 = vector.load %arg3[%c2_18, %c0_19, %c0_20] : memref<6x1x128xf32, #tpu.memory_space<vmem>>, vector<1x1x128xf32>
    %26 = vector.shape_cast %25 : vector<1x1x128xf32> to vector<1x128xf32>
    %27 = vector.broadcast %26 : vector<1x128xf32> to vector<8x128xf32>
    %28 = arith.addf %24, %27 : vector<8x128xf32>
    %cst_21 = arith.constant 0.000000e+00 : f32
    %29 = vector.broadcast %cst_21 : f32 to vector<8x128xf32>
    %30 = arith.maximumf %28, %29 : vector<8x128xf32>
    %31 = arith.truncf %30 : vector<8x128xf32> to vector<8x128xbf16>
    %c3 = arith.constant 3 : index
    %c0_22 = arith.constant 0 : index
    %c0_23 = arith.constant 0 : index
    %32 = vector.load %arg2[%c3, %c0_22, %c0_23] : memref<6x128x128xbf16, #tpu.memory_space<vmem>>, vector<1x128x128xbf16>
    %33 = vector.shape_cast %32 : vector<1x128x128xbf16> to vector<128x128xbf16>
    %cst_24 = arith.constant dense<0.000000e+00> : vector<8x128xf32>
    %34 = tpu.matmul %31, %33, %cst_24 {dimension_numbers = #tpu.dot_dimension_numbers<[1], [0], [0], [1], [0, 0, 1, 1], [], []>} : vector<8x128xbf16>, vector<128x128xbf16>, vector<8x128xf32> -> vector<8x128xf32>
    %c3_25 = arith.constant 3 : index
    %c0_26 = arith.constant 0 : index
    %c0_27 = arith.constant 0 : index
    %35 = vector.load %arg3[%c3_25, %c0_26, %c0_27] : memref<6x1x128xf32, #tpu.memory_space<vmem>>, vector<1x1x128xf32>
    %36 = vector.shape_cast %35 : vector<1x1x128xf32> to vector<1x128xf32>
    %37 = vector.broadcast %36 : vector<1x128xf32> to vector<8x128xf32>
    %38 = arith.addf %34, %37 : vector<8x128xf32>
    %cst_28 = arith.constant 0.000000e+00 : f32
    %39 = vector.broadcast %cst_28 : f32 to vector<8x128xf32>
    %40 = arith.maximumf %38, %39 : vector<8x128xf32>
    %41 = arith.truncf %40 : vector<8x128xf32> to vector<8x128xbf16>
    %c4 = arith.constant 4 : index
    %c0_29 = arith.constant 0 : index
    %c0_30 = arith.constant 0 : index
    %42 = vector.load %arg2[%c4, %c0_29, %c0_30] : memref<6x128x128xbf16, #tpu.memory_space<vmem>>, vector<1x128x128xbf16>
    %43 = vector.shape_cast %42 : vector<1x128x128xbf16> to vector<128x128xbf16>
    %cst_31 = arith.constant dense<0.000000e+00> : vector<8x128xf32>
    %44 = tpu.matmul %41, %43, %cst_31 {dimension_numbers = #tpu.dot_dimension_numbers<[1], [0], [0], [1], [0, 0, 1, 1], [], []>} : vector<8x128xbf16>, vector<128x128xbf16>, vector<8x128xf32> -> vector<8x128xf32>
    %c4_32 = arith.constant 4 : index
    %c0_33 = arith.constant 0 : index
    %c0_34 = arith.constant 0 : index
    %45 = vector.load %arg3[%c4_32, %c0_33, %c0_34] : memref<6x1x128xf32, #tpu.memory_space<vmem>>, vector<1x1x128xf32>
    %46 = vector.shape_cast %45 : vector<1x1x128xf32> to vector<1x128xf32>
    %47 = vector.broadcast %46 : vector<1x128xf32> to vector<8x128xf32>
    %48 = arith.addf %44, %47 : vector<8x128xf32>
    %cst_35 = arith.constant 0.000000e+00 : f32
    %49 = vector.broadcast %cst_35 : f32 to vector<8x128xf32>
    %50 = arith.maximumf %48, %49 : vector<8x128xf32>
    %51 = arith.truncf %50 : vector<8x128xf32> to vector<8x128xbf16>
    %c5 = arith.constant 5 : index
    %c0_36 = arith.constant 0 : index
    %c0_37 = arith.constant 0 : index
    %52 = vector.load %arg2[%c5, %c0_36, %c0_37] : memref<6x128x128xbf16, #tpu.memory_space<vmem>>, vector<1x128x128xbf16>
    %53 = vector.shape_cast %52 : vector<1x128x128xbf16> to vector<128x128xbf16>
    %cst_38 = arith.constant dense<0.000000e+00> : vector<8x128xf32>
    %54 = tpu.matmul %51, %53, %cst_38 {dimension_numbers = #tpu.dot_dimension_numbers<[1], [0], [0], [1], [0, 0, 1, 1], [], []>} : vector<8x128xbf16>, vector<128x128xbf16>, vector<8x128xf32> -> vector<8x128xf32>
    %c5_39 = arith.constant 5 : index
    %c0_40 = arith.constant 0 : index
    %c0_41 = arith.constant 0 : index
    %55 = vector.load %arg3[%c5_39, %c0_40, %c0_41] : memref<6x1x128xf32, #tpu.memory_space<vmem>>, vector<1x1x128xf32>
    %56 = vector.shape_cast %55 : vector<1x1x128xf32> to vector<1x128xf32>
    %57 = vector.broadcast %56 : vector<1x128xf32> to vector<8x128xf32>
    %58 = arith.addf %54, %57 : vector<8x128xf32>
    %c0_42 = arith.constant 0 : index
    %c0_43 = arith.constant 0 : index
    %59 = vector.load %arg4[%c0_42, %c0_43] : memref<8x128xf32, #tpu.memory_space<vmem>>, vector<8x128xf32>
    tpu.vector_store %arg4[%c0_42, %c0_43], %58 {strides = array<i32>} : memref<8x128xf32, #tpu.memory_space<vmem>>, vector<8x128xf32>,
    return
  }
  func.func @transform_0(%arg0: i32) -> (i32, i32) {
    %c0_i32 = arith.constant 0 : i32
    %c0_i32_0 = arith.constant 0 : i32
    return %arg0, %c0_i32 : i32, i32
  }
  func.func @transform_1(%arg0: i32) -> (i32, i32, i32) {
    %c0_i32 = arith.constant 0 : i32
    %c0_i32_0 = arith.constant 0 : i32
    %c0_i32_1 = arith.constant 0 : i32
    %c0_i32_2 = arith.constant 0 : i32
    return %c0_i32, %c0_i32_0, %c0_i32_1 : i32, i32, i32
  }
  func.func @transform_2(%arg0: i32) -> (i32, i32, i32) {
    %c0_i32 = arith.constant 0 : i32
    %c0_i32_0 = arith.constant 0 : i32
    %c0_i32_1 = arith.constant 0 : i32
    %c0_i32_2 = arith.constant 0 : i32
    return %c0_i32, %c0_i32_0, %c0_i32_1 : i32, i32, i32
  }
  func.func @transform_3(%arg0: i32) -> (i32, i32) {
    %c0_i32 = arith.constant 0 : i32
    %c0_i32_0 = arith.constant 0 : i32
    return %arg0, %c0_i32 : i32, i32
  }
}

</mosaic_0001>

<bundles_post_ra>
// kernel: tpu_custom_call.1
= control target key start
LH: loop header
LB: loop body
LE: loop exit
PB: predicated region body
PF: predicated region fallthrough
CT: control target
= control target key end

     0   :  { %8 = vsyncpa [#allocation3], 0  ;;  %s1162_s0 = inlined_call_operand.hbm [shape: f32[8,16], index: 0, kind: input, shape index: {}]   ;;  %s1163_s1 = inlined_call_operand.hbm [shape: bf16[6,128,128], index: 1, kind: input, shape index: {}]   ;;  %s1164_s2 = inlined_call_operand.vmem [shape: f32[6,1,128], index: 2, kind: input, shape index: {}]   ;;  %s1165_s3 = inlined_call_operand.hbm [shape: f32[8,128], index: 3, kind: output, shape index: {}]  }
   0x1   :  { %9 = vsyncpa [#allocation6], 0 }
   0x2   :  { %10 = vsyncpa [#allocation4], 0  ;;  %s1021_s12 = smov [#allocation2]   ;;  %s1022_s14 = smov [#allocation5]  }
   0x3   :  { %s17_s13 = sshll.u32 %s1021_s12, 4  ;;  %s26_s15 = sshll.u32 %s1022_s14, 4  ;;  %s18_s13 = int_to_ptr.vmem [resolvable:$true] %s17_s13  ;;  %s1048_s15 = int_to_ptr.vmem [resolvable:$true] %s26_s15 }
   0x4   :  { %s949_s18 = scalar_lea.hbm %s1162_s0, 128 }
   0x5   :  { %p950_p0 = scmp.ne.s32.totalorder %s1162_s0, %s949_s18  ;;  %p953_p1 = scmp.lt.u32.totalorder %s949_s18, %s1162_s0 }
   0x7   :  { %p955_p2 = pnand %p953_p1, %p950_p0 }
   0x9   :  { %958 = shalt.err (!%p955_p2)
}
   0xa   :  { %s959_s23 = scalar_lea.vmem %s18_s13, 128  ;;  %p964_p4 = scmp.lt.s32.totalorder %s18_s13, %s18_s13 }
   0xb   :  { %p960_p3 = scmp.ne.s32.totalorder %s18_s13, %s959_s23  ;;  %p965_p5 = scmp.lt.s32.totalorder %s959_s23, %s959_s23 }
   0xd   :  { %p966_p6 = por %p965_p5, %p964_p4 }
   0xf   :  { %p967_p7 = pnand %p966_p6, %p960_p3 }
  0x11   :  { %970 = shalt.err (!%p967_p7)
}
  0x12   :  { %20 = dma.hbm_to_vmem [thread:$0]  %s1162_s0, 128, %s18_s13, [#allocation3]  }
  0x13   :  { %s971_s28 = scalar_lea.hbm %s1163_s1, 6144 }
  0x14   :  { %p972_p8 = scmp.ne.s32.totalorder %s1163_s1, %s971_s28  ;;  %p975_p9 = scmp.lt.u32.totalorder %s971_s28, %s1163_s1 }
  0x16   :  { %p977_p10 = pnand %p975_p9, %p972_p8 }
  0x18   :  { %980 = shalt.err (!%p977_p10)
}
  0x19   :  { %s981_s6 = scalar_lea.vmem %s1048_s15, 6144  ;;  %p986_p12 = scmp.lt.s32.totalorder %s1048_s15, %s1048_s15 }
  0x1a   :  { %p982_p11 = scmp.ne.s32.totalorder %s1048_s15, %s981_s6  ;;  %p987_p13 = scmp.lt.s32.totalorder %s981_s6, %s981_s6 }
  0x1c   :  { %p988_p0 = por %p987_p13, %p986_p12 }
  0x1e   :  { %p989_p1 = pnand %p988_p0, %p982_p11 }
  0x20   :  { %992 = shalt.err (!%p989_p1)
}
  0x21   :  { %s1023_s0 = smov 64   ;;  %s1024_s7 = smov 4  }
  0x22   :  { %32 = dma.hbm_to_vmem [thread:$0]  %s1163_s1, 6144, %s1048_s15, [#allocation6], %s1023_s0, %s1023_s0, %s1024_s7  }
  0x23   :  { %1015 = dma.done.wait [#allocation3], 128  }
  0x24   :  { %1016 = vsyncadd [#allocation3], 4294967168 }
  0x25   :  { %1017 = dma.done.wait [#allocation6], 6144  }
  0x26   :  { %1018 = vsyncadd [#allocation6], 4294961152  ;;  %v1025_v0 = vmov 0.0   ;;  %vm1026_vm0 = vmmov 0   ;;  %v908_v1 = vld [vmem:[#allocation5] sm:$0xff]   ;;  %v42_v2 = vld [vmem:[#allocation2] sm:$0xff] }
  0x27   :  { %795 = vmatprep.subr.bf16.mxu0 %v1025_v0  ;;  %797 = vmatprep.mubr.msk.bf16.mxu0 %vm1026_vm0, %v1025_v0  ;;  %v43_v3 = vpack.c.bf16 %v42_v2, %v42_v2  ;;  %vm59_vm1 = vcmask 130048   ;;  %v909_v4 = vld [vmem:[#allocation5 + $0x40] sm:$0xff]   ;;  %v910_v5 = vld [vmem:[#allocation5 + $0x48] sm:$0xff]   ;;  %v911_v6 = vld [vmem:[#allocation5 + $0x50] sm:$0xff]   ;;  %s1027_s21 = smov [#allocation7]  }
  0x28   :  { %801 = vmatprep.subr.bf16.mxu1 %v1025_v0  ;;  %817 = vmatprep.mubr.msk.bf16.mxu1 %vm1026_vm0, %v1025_v0  ;;  %v912_v7 = vld [vmem:[#allocation5 + $0x58] sm:$0xff]   ;;  %v913_v8 = vld [vmem:[#allocation5 + $0x60] sm:$0xff]   ;;  %v914_v9 = vld [vmem:[#allocation5 + $0x68] sm:$0xff]   ;;  %s685_s22 = sshll.u32 %s1027_s21, 4  ;;  %s686_s22 = int_to_ptr.vmem [resolvable:$true] %s685_s22 }
  0x29   :  { %796 = vmatpush3.bf16.msra.mxu0 %v908_v1  ;;  %802 = vmatpush3.bf16.msra.mxu1 %v909_v4  ;;  %v915_v10 = vld [vmem:[#allocation5 + $0x70] sm:$0xff]   ;;  %v916_v11 = vld [vmem:[#allocation5 + $0x78] sm:$0xff]   ;;  %v917_v12 = vld [vmem:[#allocation5 + $0x80] sm:$0xff]   ;;  %s993_s23 = scalar_lea.vmem %s686_s22, 128  ;;  %p998_p3 = scmp.lt.s32.totalorder %s686_s22, %s686_s22 }
  0x2a   :  { %821 = vmatprep.subr.bf16.mxu0 %v1025_v0  ;;  %803 = vmatprep.subr.bf16.mxu1 %v1025_v0  ;;  %v918_v13 = vld [vmem:[#allocation5 + $0x88] sm:$0xff]   ;;  %v919_v14 = vld [vmem:[#allocation5 + $0x90] sm:$0xff]   ;;  %v920_v15 = vld [vmem:[#allocation5 + $0x98] sm:$0xff]   ;;  %p994_p2 = scmp.ne.s32.totalorder %s686_s22, %s993_s23  ;;  %p999_p4 = scmp.lt.s32.totalorder %s993_s23, %s993_s23 }
  0x2b   :  { %v921_v16 = vld [vmem:[#allocation5 + $0xa0] sm:$0xff]   ;;  %v922_v17 = vld [vmem:[#allocation5 + $0xa8] sm:$0xff]   ;;  %v695_v18 = vld [vmem:[%s1164_s2] ss:$0 sm:$0xff] }
  0x2c   :  { %798 = vmatmul.mubr.msk.bf16.vlgmr.msra.gmra.mrb[0].mxu0 %vm59_vm1, %v43_v3  ;;  %v923_v26 = vld [vmem:[#allocation5 + $0xb0] sm:$0xff]   ;;  %v924_v27 = vld [vmem:[#allocation5 + $0xb8] sm:$0xff]   ;;  %v925_v28 = vld [vmem:[#allocation5 + $0xc0] sm:$0xff]   ;;  %p1000_p5 = por %p999_p4, %p998_p3 }
  0x2d   :  { %837 = vmatprep.mubr.msk.bf16.mxu0 %vm1026_vm0, %v1025_v0  ;;  %804 = vmatpush3.bf16.msra.mxu1 %v910_v5  ;;  %v926_v29 = vld [vmem:[#allocation5 + $0xc8] sm:$0xff]   ;;  %v927_v30 = vld [vmem:[#allocation5 + $0xd0] sm:$0xff]   ;;  %v928_v31 = vld [vmem:[#allocation5 + $0xd8] sm:$0xff]  }
  0x2e   :  { %805 = vmatprep.subr.bf16.mxu1 %v1025_v0  ;;  %822 = vmatpush3.bf16.msra.mxu0 %v917_v12  ;;  %v929_v32 = vld [vmem:[#allocation5 + $0xe0] sm:$0xff]   ;;  %v930_v33 = vld [vmem:[#allocation5 + $0xe8] sm:$0xff]   ;;  %v699_v34 = vld [vmem:[%s1164_s2 + $0x1] ss:$0 sm:$0xff]  ;;  %p1001_p6 = pnand %p1000_p5, %p994_p2 }
  0x2f   :  { %823 = vmatprep.subr.bf16.mxu0 %v1025_v0  ;;  %v931_v42 = vld [vmem:[#allocation5 + $0xf0] sm:$0xff]   ;;  %v932_v43 = vld [vmem:[#allocation5 + $0xf8] sm:$0xff]   ;;  %v933_v44 = vld [vmem:[#allocation5 + $0x100] sm:$0xff]  }
  0x30   :  { %v934_v45 = vld [vmem:[#allocation5 + $0x108] sm:$0xff]   ;;  %v935_v46 = vld [vmem:[#allocation5 + $0x110] sm:$0xff]   ;;  %v936_v47 = vld [vmem:[#allocation5 + $0x118] sm:$0xff]  }
  0x31   :  { %806 = vmatpush3.bf16.msra.mxu1 %v911_v6  ;;  %v937_v48 = vld [vmem:[#allocation5 + $0x120] sm:$0xff]   ;;  %v938_v49 = vld [vmem:[#allocation5 + $0x128] sm:$0xff]   ;;  %v709_v50 = vld [vmem:[%s1164_s2 + $0x2] ss:$0 sm:$0xff] }
  0x32   :  { %807 = vmatprep.subr.bf16.mxu1 %v1025_v0  ;;  %824 = vmatpush3.bf16.msra.mxu0 %v918_v13  ;;  %v939_v58 = vld [vmem:[#allocation5 + $0x130] sm:$0xff]   ;;  %v940_v59 = vld [vmem:[#allocation5 + $0x138] sm:$0xff]   ;;  %v941_v60 = vld [vmem:[#allocation5 + $0x140] sm:$0xff]  }
  0x33   :  { %825 = vmatprep.subr.bf16.mxu0 %v1025_v0  ;;  %v942_v61 = vld [vmem:[#allocation5 + $0x148] sm:$0xff]   ;;  %v943_v62 = vld [vmem:[#allocation5 + $0x150] sm:$0xff]   ;;  %v944_v63 = vld [vmem:[#allocation5 + $0x158] sm:$0xff]  }
  0x34   :  { %v945_v1 = vld [vmem:[#allocation5 + $0x160] sm:$0xff]   ;;  %v946_v2 = vld [vmem:[#allocation5 + $0x168] sm:$0xff]   ;;  %v719_v3 = vld [vmem:[%s1164_s2 + $0x3] ss:$0 sm:$0xff] }
  0x35   :  { %808 = vmatpush3.bf16.msra.mxu1 %v912_v7  ;;  %v948_v12 = vld [vmem:[#allocation5 + $0x178] sm:$0xff]  }
  0x36   :  { %809 = vmatprep.subr.bf16.mxu1 %v1025_v0  ;;  %826 = vmatpush3.bf16.msra.mxu0 %v919_v14  ;;  %v729_v13 = vld [vmem:[%s1164_s2 + $0x4] ss:$0 sm:$0xff] }
  0x37   :  { %827 = vmatprep.subr.bf16.mxu0 %v1025_v0 }
  0x39   :  { %810 = vmatpush3.bf16.msra.mxu1 %v913_v8 }
  0x3a   :  { %811 = vmatprep.subr.bf16.mxu1 %v1025_v0  ;;  %828 = vmatpush3.bf16.msra.mxu0 %v920_v15 }
  0x3b   :  { %829 = vmatprep.subr.bf16.mxu0 %v1025_v0 }
  0x3d   :  { %812 = vmatpush3.bf16.msra.mxu1 %v914_v9 }
  0x3e   :  { %813 = vmatprep.subr.bf16.mxu1 %v1025_v0  ;;  %830 = vmatpush3.bf16.msra.mxu0 %v921_v16 }
  0x3f   :  { %831 = vmatprep.subr.bf16.mxu0 %v1025_v0 }
  0x41   :  { %814 = vmatpush3.bf16.msra.mxu1 %v915_v10 }
  0x42   :  { %815 = vmatprep.subr.bf16.mxu1 %v1025_v0  ;;  %832 = vmatpush3.bf16.msra.mxu0 %v922_v17 }
  0x43   :  { %833 = vmatprep.subr.bf16.mxu0 %v1025_v0 }
  0x45   :  { %816 = vmatpush3.bf16.msra.mxu1 %v916_v11  ;;  %v947_v11 = vld [vmem:[#allocation5 + $0x170] sm:$0xff]  }
  0x46   :  { %841 = vmatprep.subr.bf16.mxu1 %v1025_v0  ;;  %834 = vmatpush3.bf16.msra.mxu0 %v923_v26 }
  0x47   :  { %835 = vmatprep.subr.bf16.mxu0 %v1025_v0 }
  0x4a   :  { %836 = vmatpush3.bf16.msra.mxu0 %v924_v27 }
  0x4b   :  { %861 = vmatprep.subr.bf16.mxu0 %v1025_v0 }
  0xff   :  { %v97_v19 = vpop.f32.mrb[0].mxu0 }
 0x100   :  { %v98_v20 = vadd.f32 %v695_v18, %v97_v19  ;;  %v799_v21 = vpop.f32.mrb[1].mxu0 }
 0x101   :  { %v100_v22 = vpop.f32.mrb[2].mxu0  ;;  %v739_v21 = vld [vmem:[%s1164_s2 + $0x5] ss:$0 sm:$0xff] }
 0x102   :  { %v103_v23 = vmax.f32 %v98_v20, 0.0  ;;  %v800_v24 = vpop.f32.mrb[3].mxu0 }
 0x104   :  { %v104_v25 = vpack.c.bf16 %v103_v23, %v103_v23 }
 0x106   :  { %818 = vmatmul.mubr.bf16.vlgmr.msra.gmra.mrb[0].mxu1 %v104_v25 }
 0x107   :  { %857 = vmatprep.mubr.msk.bf16.mxu1 %vm1026_vm0, %v1025_v0  ;;  %842 = vmatpush3.bf16.msra.mxu1 %v925_v28 }
 0x108   :  { %843 = vmatprep.subr.bf16.mxu1 %v1025_v0 }
 0x10b   :  { %844 = vmatpush3.bf16.msra.mxu1 %v926_v29 }
 0x10c   :  { %845 = vmatprep.subr.bf16.mxu1 %v1025_v0 }
 0x10f   :  { %846 = vmatpush3.bf16.msra.mxu1 %v927_v30 }
 0x110   :  { %847 = vmatprep.subr.bf16.mxu1 %v1025_v0 }
 0x113   :  { %848 = vmatpush3.bf16.msra.mxu1 %v928_v31 }
 0x114   :  { %849 = vmatprep.subr.bf16.mxu1 %v1025_v0 }
 0x117   :  { %850 = vmatpush3.bf16.msra.mxu1 %v929_v32 }
 0x118   :  { %851 = vmatprep.subr.bf16.mxu1 %v1025_v0 }
 0x11b   :  { %852 = vmatpush3.bf16.msra.mxu1 %v930_v33 }
 0x11c   :  { %853 = vmatprep.subr.bf16.mxu1 %v1025_v0 }
 0x11f   :  { %854 = vmatpush3.bf16.msra.mxu1 %v931_v42 }
 0x120   :  { %855 = vmatprep.subr.bf16.mxu1 %v1025_v0 }
 0x123   :  { %856 = vmatpush3.bf16.msra.mxu1 %v932_v43 }
 0x124   :  { %881 = vmatprep.subr.bf16.mxu1 %v1025_v0 }
 0x1d9   :  { %v212_v35 = vpop.f32.mrb[0].mxu1 }
 0x1da   :  { %v213_v36 = vadd.f32 %v699_v34, %v212_v35  ;;  %v819_v37 = vpop.f32.mrb[1].mxu1 }
 0x1db   :  { %v215_v38 = vpop.f32.mrb[2].mxu1 }
 0x1dc   :  { %v218_v39 = vmax.f32 %v213_v36, 0.0  ;;  %v820_v40 = vpop.f32.mrb[3].mxu1 }
 0x1de   :  { %v219_v41 = vpack.c.bf16 %v218_v39, %v218_v39 }
 0x1e0   :  { %838 = vmatmul.mubr.bf16.vlgmr.msra.gmra.mrb[4].mxu0 %v219_v41 }
 0x1e1   :  { %877 = vmatprep.mubr.msk.bf16.mxu0 %vm1026_vm0, %v1025_v0  ;;  %862 = vmatpush3.bf16.msra.mxu0 %v933_v44 }
 0x1e2   :  { %863 = vmatprep.subr.bf16.mxu0 %v1025_v0 }
 0x1e5   :  { %864 = vmatpush3.bf16.msra.mxu0 %v934_v45 }
 0x1e6   :  { %865 = vmatprep.subr.bf16.mxu0 %v1025_v0 }
 0x1e9   :  { %866 = vmatpush3.bf16.msra.mxu0 %v935_v46 }
 0x1ea   :  { %867 = vmatprep.subr.bf16.mxu0 %v1025_v0 }
 0x1ed   :  { %868 = vmatpush3.bf16.msra.mxu0 %v936_v47 }
 0x1ee   :  { %869 = vmatprep.subr.bf16.mxu0 %v1025_v0 }
 0x1f1   :  { %870 = vmatpush3.bf16.msra.mxu0 %v937_v48 }
 0x1f2   :  { %871 = vmatprep.subr.bf16.mxu0 %v1025_v0 }
 0x1f5   :  { %872 = vmatpush3.bf16.msra.mxu0 %v938_v49 }
 0x1f6   :  { %873 = vmatprep.subr.bf16.mxu0 %v1025_v0 }
 0x1f9   :  { %874 = vmatpush3.bf16.msra.mxu0 %v939_v58 }
 0x1fa   :  { %875 = vmatprep.subr.bf16.mxu0 %v1025_v0 }
 0x1fd   :  { %876 = vmatpush3.bf16.msra.mxu0 %v940_v59 }
 0x2b3   :  { %v327_v51 = vpop.f32.mrb[4].mxu0 }
 0x2b4   :  { %v328_v52 = vadd.f32 %v709_v50, %v327_v51  ;;  %v839_v53 = vpop.f32.mrb[5].mxu0 }
 0x2b5   :  { %v330_v54 = vpop.f32.mrb[6].mxu0 }
 0x2b6   :  { %v333_v55 = vmax.f32 %v328_v52, 0.0  ;;  %v840_v56 = vpop.f32.mrb[7].mxu0 }
 0x2b8   :  { %v334_v57 = vpack.c.bf16 %v333_v55, %v333_v55 }
 0x2ba   :  { %858 = vmatmul.mubr.bf16.vlgmr.msra.gmra.mrb[4].mxu1 %v334_v57 }
 0x2bb   :  { %897 = vmatprep.mubr.msk.bf16.mxu1 %vm1026_vm0, %v1025_v0  ;;  %882 = vmatpush3.bf16.msra.mxu1 %v941_v60 }
 0x2bc   :  { %883 = vmatprep.subr.bf16.mxu1 %v1025_v0 }
 0x2bf   :  { %884 = vmatpush3.bf16.msra.mxu1 %v942_v61 }
 0x2c0   :  { %885 = vmatprep.subr.bf16.mxu1 %v1025_v0 }
 0x2c3   :  { %886 = vmatpush3.bf16.msra.mxu1 %v943_v62 }
 0x2c4   :  { %887 = vmatprep.subr.bf16.mxu1 %v1025_v0 }
 0x2c7   :  { %888 = vmatpush3.bf16.msra.mxu1 %v944_v63 }
 0x2c8   :  { %889 = vmatprep.subr.bf16.mxu1 %v1025_v0 }
 0x2cb   :  { %890 = vmatpush3.bf16.msra.mxu1 %v945_v1 }
 0x2cc   :  { %891 = vmatprep.subr.bf16.mxu1 %v1025_v0 }
 0x2cf   :  { %892 = vmatpush3.bf16.msra.mxu1 %v946_v2 }
 0x2d0   :  { %893 = vmatprep.subr.bf16.mxu1 %v1025_v0 }
 0x2d3   :  { %894 = vmatpush3.bf16.msra.mxu1 %v947_v11 }
 0x2d4   :  { %895 = vmatprep.subr.bf16.mxu1 %v1025_v0 }
 0x2d7   :  { %896 = vmatpush3.bf16.msra.mxu1 %v948_v12 }
 0x38d   :  { %v442_v4 = vpop.f32.mrb[4].mxu1 }
 0x38e   :  { %v443_v5 = vadd.f32 %v719_v3, %v442_v4  ;;  %v859_v6 = vpop.f32.mrb[5].mxu1 }
 0x38f   :  { %v445_v7 = vpop.f32.mrb[6].mxu1 }
 0x390   :  { %v448_v8 = vmax.f32 %v443_v5, 0.0  ;;  %v860_v9 = vpop.f32.mrb[7].mxu1 }
 0x392   :  { %v449_v10 = vpack.c.bf16 %v448_v8, %v448_v8 }
 0x394   :  { %878 = vmatmul.mubr.bf16.vlgmr.msra.gmra.mrb[8].mxu0 %v449_v10 }
 0x467   :  { %v557_v14 = vpop.f32.mrb[8].mxu0 }
 0x468   :  { %v558_v15 = vadd.f32 %v729_v13, %v557_v14  ;;  %v879_v16 = vpop.f32.mrb[9].mxu0 }
 0x469   :  { %v560_v17 = vpop.f32.mrb[10].mxu0 }
 0x46a   :  { %v563_v18 = vmax.f32 %v558_v15, 0.0  ;;  %v880_v19 = vpop.f32.mrb[11].mxu0 }
 0x46c   :  { %v564_v20 = vpack.c.bf16 %v563_v18, %v563_v18 }
 0x46e   :  { %898 = vmatmul.mubr.bf16.vlgmr.msra.gmra.mrb[8].mxu1 %v564_v20 }
 0x541   :  { %v672_v0 = vpop.f32.mrb[8].mxu1 }
 0x542   :  { %v673_v22 = vadd.f32 %v739_v21, %v672_v0  ;;  %v899_v23 = vpop.f32.mrb[9].mxu1 }
 0x543   :  { %v675_v24 = vpop.f32.mrb[10].mxu1 }
 0x544   :  { %678 = vst [vmem:[#allocation7] sm:$0xff] %v673_v22  ;;  %v900_v25 = vpop.f32.mrb[11].mxu1 }
 0x545   :  { %1004 = shalt.err (!%p1001_p6)
}
 0x546   :  { %s1005_s2 = scalar_lea.hbm %s1165_s3, 128 }
 0x547   :  { %p1006_p7 = scmp.ne.s32.totalorder %s1165_s3, %s1005_s2  ;;  %p1009_p8 = scmp.lt.u32.totalorder %s1005_s2, %s1165_s3 }
 0x549   :  { %p1011_p9 = pnand %p1009_p8, %p1006_p7 }
 0x54b   :  { %1014 = shalt.err (!%p1011_p9)
}
 0x54c   :  { %688 = dma.vmem_to_hbm [thread:$0]  %s686_s22, 128, %s1165_s3, [#allocation4]  }
 0x54d   :  { %1019 = dma.done.wait [#allocation4], 128  }
 0x54e   :  { %1020 = vsyncadd [#allocation4], 4294967168 }
 0x54f   :  { %692 = vsyncpa [#allocation3], 1 }
 0x550   :  { %693 = vsyncpa [#allocation6], 1 }
 0x551   :  { %694 = vsyncpa [#allocation4], 1 }

</bundles_post_ra>
